<compile_context>
chip_gen: v5e
topology: v5e:2x2
jax: 0.10.0
libtpu: 0.0.40
codegen_flags: <defaults>
</compile_context>

<pallas_src>
import math
import functools

import jax
import jax.numpy as jnp
import numpy as np
from jax import lax
from jax.experimental import pallas as pl
from jax.experimental.pallas import tpu as pltpu


# ---------------------------------------------------------------------------
# Fused QKV-projection + scaled-dot-product-attention kernel.
# One grid step handles `heads_per_block` heads of one batch element.
# ---------------------------------------------------------------------------
def fused_attention_kernel(x_ref, wq_ref, bq_ref, wk_ref, bk_ref, wv_ref,
                           bv_ref, mask_ref, o_ref, *,
                           scale, head_dim, heads_per_block, compute_dtype):
    # Activations for this batch element; cast to the MXU compute dtype.
    x = x_ref[0].astype(compute_dtype)                       # (S, H)

    # Q/K/V projections for this head-group's column slab.  Weights are
    # pre-transposed to [in, out] and pre-cast to compute_dtype; accumulate in
    # f32 on the MXU, bias add in f32.
    q = jnp.dot(x, wq_ref[...], preferred_element_type=jnp.float32) + bq_ref[...]
    k = jnp.dot(x, wk_ref[...], preferred_element_type=jnp.float32) + bk_ref[...]
    v = jnp.dot(x, wv_ref[...], preferred_element_type=jnp.float32) + bv_ref[...]

    # Fold 1/sqrt(d) into q once per slab (cheaper than scaling each (S,S)
    # score tile), then cast whole slabs to the MXU dtype once.
    q = (q * scale).astype(compute_dtype)                    # (S, hp*d)
    k = k.astype(compute_dtype)
    v = v.astype(compute_dtype)

    mask = mask_ref[0, 0]                                    # (1, S), additive, f32

    ctx_slabs = []
    for h in range(heads_per_block):                         # static unroll
        lo = h * head_dim
        qh = q[:, lo:lo + head_dim]                          # (S, d)
        kh = k[:, lo:lo + head_dim]                          # (S, d)
        vh = v[:, lo:lo + head_dim]                          # (S, d)

        # q @ k^T without materializing a transpose of k: contract last dims.
        scores = lax.dot_general(
            qh, kh, (((1,), (1,)), ((), ())),
            preferred_element_type=jnp.float32)              # (S, S), f32
        scores = scores + mask                               # broadcast over rows

        m = jnp.max(scores, axis=-1, keepdims=True)
        e = jnp.exp(scores - m)                              # EUP
        denom = jnp.sum(e, axis=-1, keepdims=True)           # XLU
        probs = (e * pl.reciprocal(denom, approx=True)).astype(compute_dtype)

        ctx_slabs.append(
            jnp.dot(probs, vh, preferred_element_type=jnp.float32))

    ctx = ctx_slabs[0] if heads_per_block == 1 else jnp.concatenate(
        ctx_slabs, axis=-1)                                  # (S, hp*d)
    # Single lane-dense store of the whole head-group slab.
    o_ref[0] = ctx.astype(o_ref.dtype)


def _choose_heads_per_block(num_heads, head_dim):
    """Pack heads so the block's last dim is a multiple of 128 lanes when possible."""
    if head_dim % 128 == 0:
        return 1
    if 128 % head_dim == 0:
        target = 128 // head_dim
        if num_heads % target == 0:
            return target
    # Fall back to the full hidden slab (block == full array dim is always legal).
    return num_heads


# ---------------------------------------------------------------------------
# Python wrapper mirroring RobertaSelfAttention.forward (absolute pos. emb.)
# ---------------------------------------------------------------------------
def roberta_self_attention(hidden_states, attention_mask, params,
                           num_attention_heads, *,
                           compute_dtype=jnp.bfloat16):
    B, S, H = hidden_states.shape
    assert H % num_attention_heads == 0
    d = H // num_attention_heads
    hp = _choose_heads_per_block(num_attention_heads, d)
    n_groups = num_attention_heads // hp
    slab = hp * d
    scale = 1.0 / math.sqrt(d)

    # nn.Linear stores weight as [out, in]; pre-transpose to [in, out] and
    # pre-cast to the MXU compute dtype (halves weight DMA traffic).
    wq = params["wq"].T.astype(compute_dtype)
    wk = params["wk"].T.astype(compute_dtype)
    wv = params["wv"].T.astype(compute_dtype)
    bq = params["bq"][None, :].astype(jnp.float32)
    bk = params["bk"][None, :].astype(jnp.float32)
    bv = params["bv"][None, :].astype(jnp.float32)

    if attention_mask is None:
        attention_mask = jnp.zeros((B, 1, 1, S), jnp.float32)
    attention_mask = attention_mask.astype(jnp.float32)

    # BlockSpecs: heads are column slabs of the [B, S, H] layout -> no
    # transpose/reshape glue before or after the kernel.
    x_spec = pl.BlockSpec((1, S, H), lambda b, g: (b, 0, 0))     # constant in g
    w_spec = pl.BlockSpec((H, slab), lambda b, g: (0, g))
    b_spec = pl.BlockSpec((1, slab), lambda b, g: (0, g))
    m_spec = pl.BlockSpec((1, 1, 1, S), lambda b, g: (b, 0, 0, 0))
    o_spec = pl.BlockSpec((1, S, slab), lambda b, g: (b, 0, g))

    kernel = functools.partial(
        fused_attention_kernel,
        scale=scale, head_dim=d, heads_per_block=hp,
        compute_dtype=compute_dtype)

    itemsize_in = hidden_states.dtype.itemsize
    itemsize_w = jnp.dtype(compute_dtype).itemsize
    flops = 2 * B * S * H * (3 * H) + 4 * B * num_attention_heads * S * S * d
    transcendentals = B * num_attention_heads * S * S
    bytes_accessed = (B * S * H * itemsize_in            # x (once per batch)
                      + B * 3 * H * H * itemsize_w       # weights (re-read per batch)
                      + B * S * H * itemsize_in          # output
                      + B * S * 4 + 3 * H * 4)           # mask + biases

    return pl.pallas_call(
        kernel,
        grid=(B, n_groups),
        in_specs=[x_spec, w_spec, b_spec, w_spec, b_spec, w_spec, b_spec,
                  m_spec],
        out_specs=o_spec,
        out_shape=jax.ShapeDtypeStruct((B, S, H), hidden_states.dtype),
        compiler_params=pltpu.CompilerParams(
            dimension_semantics=("parallel", "parallel")),
        cost_estimate=pl.CostEstimate(flops=flops,
                                      transcendentals=transcendentals,
                                      bytes_accessed=bytes_accessed),
    )(hidden_states, wq, bq, wk, bk, wv, bv, attention_mask)


# ---------------------------------------------------------------------------
# Pure-JAX (f32) reference for verification.
# ---------------------------------------------------------------------------
def reference(hidden_states, attention_mask, params, num_attention_heads):
    B, S, H = hidden_states.shape
    d = H // num_attention_heads
    q = hidden_states @ params["wq"].T + params["bq"]
    k = hidden_states @ params["wk"].T + params["bk"]
    v = hidden_states @ params["wv"].T + params["bv"]

    def split(x):
        return x.reshape(B, S, num_attention_heads, d).transpose(0, 2, 1, 3)

    qh, kh, vh = split(q), split(k), split(v)
    scores = jnp.einsum("bhqd,bhkd->bhqk", qh, kh) / math.sqrt(d)
    scores = scores + attention_mask
    probs = jax.nn.softmax(scores, axis=-1)
    ctx = jnp.einsum("bhqk,bhkd->bhqd", probs, vh)
    return ctx.transpose(0, 2, 1, 3).reshape(B, S, H)


if __name__ == "__main__":
    # Small config: batch=2, seq=8, hidden=32, heads=4 (head_dim=8).
    B, S, H, nH = 2, 8, 32, 4

    key = jax.random.PRNGKey(0)
    k_x, k_wq, k_wk, k_wv, k_bq, k_bk, k_bv, k_m = jax.random.split(key, 8)

    hidden_states = jax.random.normal(k_x, (B, S, H), dtype=jnp.float32)

    params = {
        "wq": 0.02 * jax.random.normal(k_wq, (H, H), dtype=jnp.float32),
        "wk": 0.02 * jax.random.normal(k_wk, (H, H), dtype=jnp.float32),
        "wv": 0.02 * jax.random.normal(k_wv, (H, H), dtype=jnp.float32),
        "bq": 0.02 * jax.random.normal(k_bq, (H,), dtype=jnp.float32),
        "bk": 0.02 * jax.random.normal(k_bk, (H,), dtype=jnp.float32),
        "bv": 0.02 * jax.random.normal(k_bv, (H,), dtype=jnp.float32),
    }

    # HF-style additive mask [B, 1, 1, S]: mask out the last 2 key positions of
    # batch element 1.
    mask = jnp.zeros((B, 1, 1, S), dtype=jnp.float32)
    mask = mask.at[1, 0, 0, -2:].set(-10000.0)

    out = roberta_self_attention(hidden_states, mask, params, nH)
    out = jax.block_until_ready(out)

    ref = reference(hidden_states, mask, params, nH)
    # Tolerance relaxed vs pure f32: matmuls run in bf16 (f32 accumulation) and
    # the softmax reciprocal is the EUP approx form.
    np.testing.assert_allclose(np.asarray(out), np.asarray(ref),
                               rtol=5e-2, atol=1e-2)
    print("KERNEL_OK")
</pallas_src>

<mosaic_0001>
module attributes {stable_mosaic.version = 11 : i64} {
  func.func @fused_attention_kernel(%arg0: i32, %arg1: i32, %arg2: memref<1x8x32xf32, #tpu.memory_space<vmem>>, %arg3: memref<32x32xbf16, #tpu.memory_space<vmem>>, %arg4: memref<1x32xf32, #tpu.memory_space<vmem>>, %arg5: memref<32x32xbf16, #tpu.memory_space<vmem>>, %arg6: memref<1x32xf32, #tpu.memory_space<vmem>>, %arg7: memref<32x32xbf16, #tpu.memory_space<vmem>>, %arg8: memref<1x32xf32, #tpu.memory_space<vmem>>, %arg9: memref<1x1x1x8xf32, #tpu.memory_space<vmem>>, %arg10: memref<1x8x32xf32, #tpu.memory_space<vmem>>) attributes {dimension_semantics = [#tpu.dimension_semantics<parallel>, #tpu.dimension_semantics<parallel>], iteration_bounds = array<i64: 2, 1>, scalar_prefetch = 0 : i64, scratch_operands = 0 : i64, tpu.core_type = #tpu.core_type<tc>, window_params = [{transform_indices = @transform_0, window_bounds = array<i64: 1, 8, 32>}, {transform_indices = @transform_1, window_bounds = array<i64: 32, 32>}, {transform_indices = @transform_2, window_bounds = array<i64: 1, 32>}, {transform_indices = @transform_3, window_bounds = array<i64: 32, 32>}, {transform_indices = @transform_4, window_bounds = array<i64: 1, 32>}, {transform_indices = @transform_5, window_bounds = array<i64: 32, 32>}, {transform_indices = @transform_6, window_bounds = array<i64: 1, 32>}, {transform_indices = @transform_7, window_bounds = array<i64: 1, 1, 1, 8>}, {transform_indices = @transform_8, window_bounds = array<i64: 1, 8, 32>}]} {
    %c0 = arith.constant 0 : index
    %c0_0 = arith.constant 0 : index
    %c0_1 = arith.constant 0 : index
    %0 = vector.load %arg2[%c0, %c0_0, %c0_1] : memref<1x8x32xf32, #tpu.memory_space<vmem>>, vector<1x8x32xf32>
    %1 = vector.shape_cast %0 : vector<1x8x32xf32> to vector<8x32xf32>
    %2 = arith.truncf %1 : vector<8x32xf32> to vector<8x32xbf16>
    %c0_2 = arith.constant 0 : index
    %c0_3 = arith.constant 0 : index
    %3 = vector.load %arg3[%c0_2, %c0_3] : memref<32x32xbf16, #tpu.memory_space<vmem>>, vector<32x32xbf16>
    %cst = arith.constant dense<0.000000e+00> : vector<8x32xf32>
    %4 = tpu.matmul %2, %3, %cst {dimension_numbers = #tpu.dot_dimension_numbers<[1], [0], [0], [1], [0, 0, 1, 1], [], []>} : vector<8x32xbf16>, vector<32x32xbf16>, vector<8x32xf32> -> vector<8x32xf32>
    %c0_4 = arith.constant 0 : index
    %c0_5 = arith.constant 0 : index
    %5 = vector.load %arg4[%c0_4, %c0_5] : memref<1x32xf32, #tpu.memory_space<vmem>>, vector<1x32xf32>
    %6 = vector.broadcast %5 : vector<1x32xf32> to vector<8x32xf32>
    %7 = arith.addf %4, %6 : vector<8x32xf32>
    %c0_6 = arith.constant 0 : index
    %c0_7 = arith.constant 0 : index
    %8 = vector.load %arg5[%c0_6, %c0_7] : memref<32x32xbf16, #tpu.memory_space<vmem>>, vector<32x32xbf16>
    %cst_8 = arith.constant dense<0.000000e+00> : vector<8x32xf32>
    %9 = tpu.matmul %2, %8, %cst_8 {dimension_numbers = #tpu.dot_dimension_numbers<[1], [0], [0], [1], [0, 0, 1, 1], [], []>} : vector<8x32xbf16>, vector<32x32xbf16>, vector<8x32xf32> -> vector<8x32xf32>
    %c0_9 = arith.constant 0 : index
    %c0_10 = arith.constant 0 : index
    %10 = vector.load %arg6[%c0_9, %c0_10] : memref<1x32xf32, #tpu.memory_space<vmem>>, vector<1x32xf32>
    %11 = vector.broadcast %10 : vector<1x32xf32> to vector<8x32xf32>
    %12 = arith.addf %9, %11 : vector<8x32xf32>
    %c0_11 = arith.constant 0 : index
    %c0_12 = arith.constant 0 : index
    %13 = vector.load %arg7[%c0_11, %c0_12] : memref<32x32xbf16, #tpu.memory_space<vmem>>, vector<32x32xbf16>
    %cst_13 = arith.constant dense<0.000000e+00> : vector<8x32xf32>
    %14 = tpu.matmul %2, %13, %cst_13 {dimension_numbers = #tpu.dot_dimension_numbers<[1], [0], [0], [1], [0, 0, 1, 1], [], []>} : vector<8x32xbf16>, vector<32x32xbf16>, vector<8x32xf32> -> vector<8x32xf32>
    %c0_14 = arith.constant 0 : index
    %c0_15 = arith.constant 0 : index
    %15 = vector.load %arg8[%c0_14, %c0_15] : memref<1x32xf32, #tpu.memory_space<vmem>>, vector<1x32xf32>
    %16 = vector.broadcast %15 : vector<1x32xf32> to vector<8x32xf32>
    %17 = arith.addf %14, %16 : vector<8x32xf32>
    %cst_16 = arith.constant 0.353553385 : f32
    %18 = vector.broadcast %cst_16 : f32 to vector<8x32xf32>
    %19 = arith.mulf %7, %18 : vector<8x32xf32>
    %20 = arith.truncf %19 : vector<8x32xf32> to vector<8x32xbf16>
    %21 = arith.truncf %12 : vector<8x32xf32> to vector<8x32xbf16>
    %22 = arith.truncf %17 : vector<8x32xf32> to vector<8x32xbf16>
    %c0_17 = arith.constant 0 : index
    %c0_18 = arith.constant 0 : index
    %c0_19 = arith.constant 0 : index
    %c0_20 = arith.constant 0 : index
    %23 = vector.load %arg9[%c0_17, %c0_18, %c0_19, %c0_20] : memref<1x1x1x8xf32, #tpu.memory_space<vmem>>, vector<1x1x1x8xf32>
    %24 = vector.shape_cast %23 : vector<1x1x1x8xf32> to vector<1x8xf32>
    %25 = vector.extract_strided_slice %20 {offsets = [0, 0], sizes = [8, 8], strides = [1, 1]} : vector<8x32xbf16> to vector<8x8xbf16>
    %26 = vector.extract_strided_slice %21 {offsets = [0, 0], sizes = [8, 8], strides = [1, 1]} : vector<8x32xbf16> to vector<8x8xbf16>
    %27 = vector.extract_strided_slice %22 {offsets = [0, 0], sizes = [8, 8], strides = [1, 1]} : vector<8x32xbf16> to vector<8x8xbf16>
    %cst_21 = arith.constant dense<0.000000e+00> : vector<8x8xf32>
    %28 = tpu.matmul %25, %26, %cst_21 {dimension_numbers = #tpu.dot_dimension_numbers<[1], [1], [0], [0], [0, 0, 1, 0], [], []>} : vector<8x8xbf16>, vector<8x8xbf16>, vector<8x8xf32> -> vector<8x8xf32>
    %29 = vector.broadcast %24 : vector<1x8xf32> to vector<8x8xf32>
    %30 = arith.addf %28, %29 : vector<8x8xf32>
    %cst_22 = arith.constant dense<0xFF800000> : vector<8xf32>
    %31 = vector.multi_reduction <maximumf>, %30, %cst_22 [1] : vector<8x8xf32> to vector<8xf32>
    %32 = vector.shape_cast %31 : vector<8xf32> to vector<8x1xf32>
    %33 = vector.broadcast %32 : vector<8x1xf32> to vector<8x8xf32>
    %34 = arith.subf %30, %33 : vector<8x8xf32>
    %35 = math.exp %34 : vector<8x8xf32>
    %cst_23 = arith.constant dense<0.000000e+00> : vector<8xf32>
    %36 = vector.multi_reduction <add>, %35, %cst_23 [1] : vector<8x8xf32> to vector<8xf32>
    %37 = vector.shape_cast %36 : vector<8xf32> to vector<8x1xf32>
    %38 = tpu.reciprocal %37 {approx = true} : vector<8x1xf32> -> vector<8x1xf32>
    %39 = vector.broadcast %38 : vector<8x1xf32> to vector<8x8xf32>
    %40 = arith.mulf %35, %39 : vector<8x8xf32>
    %41 = arith.truncf %40 : vector<8x8xf32> to vector<8x8xbf16>
    %cst_24 = arith.constant dense<0.000000e+00> : vector<8x8xf32>
    %42 = tpu.matmul %41, %27, %cst_24 {dimension_numbers = #tpu.dot_dimension_numbers<[1], [0], [0], [1], [0, 0, 1, 1], [], []>} : vector<8x8xbf16>, vector<8x8xbf16>, vector<8x8xf32> -> vector<8x8xf32>
    %43 = vector.extract_strided_slice %20 {offsets = [0, 8], sizes = [8, 8], strides = [1, 1]} : vector<8x32xbf16> to vector<8x8xbf16>
    %44 = vector.extract_strided_slice %21 {offsets = [0, 8], sizes = [8, 8], strides = [1, 1]} : vector<8x32xbf16> to vector<8x8xbf16>
    %45 = vector.extract_strided_slice %22 {offsets = [0, 8], sizes = [8, 8], strides = [1, 1]} : vector<8x32xbf16> to vector<8x8xbf16>
    %cst_25 = arith.constant dense<0.000000e+00> : vector<8x8xf32>
    %46 = tpu.matmul %43, %44, %cst_25 {dimension_numbers = #tpu.dot_dimension_numbers<[1], [1], [0], [0], [0, 0, 1, 0], [], []>} : vector<8x8xbf16>, vector<8x8xbf16>, vector<8x8xf32> -> vector<8x8xf32>
    %47 = vector.broadcast %24 : vector<1x8xf32> to vector<8x8xf32>
    %48 = arith.addf %46, %47 : vector<8x8xf32>
    %cst_26 = arith.constant dense<0xFF800000> : vector<8xf32>
    %49 = vector.multi_reduction <maximumf>, %48, %cst_26 [1] : vector<8x8xf32> to vector<8xf32>
    %50 = vector.shape_cast %49 : vector<8xf32> to vector<8x1xf32>
    %51 = vector.broadcast %50 : vector<8x1xf32> to vector<8x8xf32>
    %52 = arith.subf %48, %51 : vector<8x8xf32>
    %53 = math.exp %52 : vector<8x8xf32>
    %cst_27 = arith.constant dense<0.000000e+00> : vector<8xf32>
    %54 = vector.multi_reduction <add>, %53, %cst_27 [1] : vector<8x8xf32> to vector<8xf32>
    %55 = vector.shape_cast %54 : vector<8xf32> to vector<8x1xf32>
    %56 = tpu.reciprocal %55 {approx = true} : vector<8x1xf32> -> vector<8x1xf32>
    %57 = vector.broadcast %56 : vector<8x1xf32> to vector<8x8xf32>
    %58 = arith.mulf %53, %57 : vector<8x8xf32>
    %59 = arith.truncf %58 : vector<8x8xf32> to vector<8x8xbf16>
    %cst_28 = arith.constant dense<0.000000e+00> : vector<8x8xf32>
    %60 = tpu.matmul %59, %45, %cst_28 {dimension_numbers = #tpu.dot_dimension_numbers<[1], [0], [0], [1], [0, 0, 1, 1], [], []>} : vector<8x8xbf16>, vector<8x8xbf16>, vector<8x8xf32> -> vector<8x8xf32>
    %61 = vector.extract_strided_slice %20 {offsets = [0, 16], sizes = [8, 8], strides = [1, 1]} : vector<8x32xbf16> to vector<8x8xbf16>
    %62 = vector.extract_strided_slice %21 {offsets = [0, 16], sizes = [8, 8], strides = [1, 1]} : vector<8x32xbf16> to vector<8x8xbf16>
    %63 = vector.extract_strided_slice %22 {offsets = [0, 16], sizes = [8, 8], strides = [1, 1]} : vector<8x32xbf16> to vector<8x8xbf16>
    %cst_29 = arith.constant dense<0.000000e+00> : vector<8x8xf32>
    %64 = tpu.matmul %61, %62, %cst_29 {dimension_numbers = #tpu.dot_dimension_numbers<[1], [1], [0], [0], [0, 0, 1, 0], [], []>} : vector<8x8xbf16>, vector<8x8xbf16>, vector<8x8xf32> -> vector<8x8xf32>
    %65 = vector.broadcast %24 : vector<1x8xf32> to vector<8x8xf32>
    %66 = arith.addf %64, %65 : vector<8x8xf32>
    %cst_30 = arith.constant dense<0xFF800000> : vector<8xf32>
    %67 = vector.multi_reduction <maximumf>, %66, %cst_30 [1] : vector<8x8xf32> to vector<8xf32>
    %68 = vector.shape_cast %67 : vector<8xf32> to vector<8x1xf32>
    %69 = vector.broadcast %68 : vector<8x1xf32> to vector<8x8xf32>
    %70 = arith.subf %66, %69 : vector<8x8xf32>
    %71 = math.exp %70 : vector<8x8xf32>
    %cst_31 = arith.constant dense<0.000000e+00> : vector<8xf32>
    %72 = vector.multi_reduction <add>, %71, %cst_31 [1] : vector<8x8xf32> to vector<8xf32>
    %73 = vector.shape_cast %72 : vector<8xf32> to vector<8x1xf32>
    %74 = tpu.reciprocal %73 {approx = true} : vector<8x1xf32> -> vector<8x1xf32>
    %75 = vector.broadcast %74 : vector<8x1xf32> to vector<8x8xf32>
    %76 = arith.mulf %71, %75 : vector<8x8xf32>
    %77 = arith.truncf %76 : vector<8x8xf32> to vector<8x8xbf16>
    %cst_32 = arith.constant dense<0.000000e+00> : vector<8x8xf32>
    %78 = tpu.matmul %77, %63, %cst_32 {dimension_numbers = #tpu.dot_dimension_numbers<[1], [0], [0], [1], [0, 0, 1, 1], [], []>} : vector<8x8xbf16>, vector<8x8xbf16>, vector<8x8xf32> -> vector<8x8xf32>
    %79 = vector.extract_strided_slice %20 {offsets = [0, 24], sizes = [8, 8], strides = [1, 1]} : vector<8x32xbf16> to vector<8x8xbf16>
    %80 = vector.extract_strided_slice %21 {offsets = [0, 24], sizes = [8, 8], strides = [1, 1]} : vector<8x32xbf16> to vector<8x8xbf16>
    %81 = vector.extract_strided_slice %22 {offsets = [0, 24], sizes = [8, 8], strides = [1, 1]} : vector<8x32xbf16> to vector<8x8xbf16>
    %cst_33 = arith.constant dense<0.000000e+00> : vector<8x8xf32>
    %82 = tpu.matmul %79, %80, %cst_33 {dimension_numbers = #tpu.dot_dimension_numbers<[1], [1], [0], [0], [0, 0, 1, 0], [], []>} : vector<8x8xbf16>, vector<8x8xbf16>, vector<8x8xf32> -> vector<8x8xf32>
    %83 = vector.broadcast %24 : vector<1x8xf32> to vector<8x8xf32>
    %84 = arith.addf %82, %83 : vector<8x8xf32>
    %cst_34 = arith.constant dense<0xFF800000> : vector<8xf32>
    %85 = vector.multi_reduction <maximumf>, %84, %cst_34 [1] : vector<8x8xf32> to vector<8xf32>
    %86 = vector.shape_cast %85 : vector<8xf32> to vector<8x1xf32>
    %87 = vector.broadcast %86 : vector<8x1xf32> to vector<8x8xf32>
    %88 = arith.subf %84, %87 : vector<8x8xf32>
    %89 = math.exp %88 : vector<8x8xf32>
    %cst_35 = arith.constant dense<0.000000e+00> : vector<8xf32>
    %90 = vector.multi_reduction <add>, %89, %cst_35 [1] : vector<8x8xf32> to vector<8xf32>
    %91 = vector.shape_cast %90 : vector<8xf32> to vector<8x1xf32>
    %92 = tpu.reciprocal %91 {approx = true} : vector<8x1xf32> -> vector<8x1xf32>
    %93 = vector.broadcast %92 : vector<8x1xf32> to vector<8x8xf32>
    %94 = arith.mulf %89, %93 : vector<8x8xf32>
    %95 = arith.truncf %94 : vector<8x8xf32> to vector<8x8xbf16>
    %cst_36 = arith.constant dense<0.000000e+00> : vector<8x8xf32>
    %96 = tpu.matmul %95, %81, %cst_36 {dimension_numbers = #tpu.dot_dimension_numbers<[1], [0], [0], [1], [0, 0, 1, 1], [], []>} : vector<8x8xbf16>, vector<8x8xbf16>, vector<8x8xf32> -> vector<8x8xf32>
    %97 = tpu.concatenate %42, %60, %78, %96 in 1 : vector<8x8xf32>, vector<8x8xf32>, vector<8x8xf32>, vector<8x8xf32> -> vector<8x32xf32>
    %c0_37 = arith.constant 0 : index
    %c0_38 = arith.constant 0 : index
    %c0_39 = arith.constant 0 : index
    %98 = vector.load %arg10[%c0_37, %c0_38, %c0_39] : memref<1x8x32xf32, #tpu.memory_space<vmem>>, vector<1x8x32xf32>
    %99 = vector.shape_cast %98 : vector<1x8x32xf32> to vector<8x32xf32>
    %100 = vector.shape_cast %97 : vector<8x32xf32> to vector<1x8x32xf32>
    tpu.vector_store %arg10[%c0_37, %c0_38, %c0_39], %100 {strides = array<i32>} : memref<1x8x32xf32, #tpu.memory_space<vmem>>, vector<1x8x32xf32>,
    return
  }
  func.func @transform_0(%arg0: i32, %arg1: i32) -> (i32, i32, i32) {
    %c0_i32 = arith.constant 0 : i32
    %c0_i32_0 = arith.constant 0 : i32
    %c0_i32_1 = arith.constant 0 : i32
    return %arg0, %c0_i32, %c0_i32_0 : i32, i32, i32
  }
  func.func @transform_1(%arg0: i32, %arg1: i32) -> (i32, i32) {
    %c0_i32 = arith.constant 0 : i32
    %c0_i32_0 = arith.constant 0 : i32
    return %c0_i32, %arg1 : i32, i32
  }
  func.func @transform_2(%arg0: i32, %arg1: i32) -> (i32, i32) {
    %c0_i32 = arith.constant 0 : i32
    %c0_i32_0 = arith.constant 0 : i32
    return %c0_i32, %arg1 : i32, i32
  }
  func.func @transform_3(%arg0: i32, %arg1: i32) -> (i32, i32) {
    %c0_i32 = arith.constant 0 : i32
    %c0_i32_0 = arith.constant 0 : i32
    return %c0_i32, %arg1 : i32, i32
  }
  func.func @transform_4(%arg0: i32, %arg1: i32) -> (i32, i32) {
    %c0_i32 = arith.constant 0 : i32
    %c0_i32_0 = arith.constant 0 : i32
    return %c0_i32, %arg1 : i32, i32
  }
  func.func @transform_5(%arg0: i32, %arg1: i32) -> (i32, i32) {
    %c0_i32 = arith.constant 0 : i32
    %c0_i32_0 = arith.constant 0 : i32
    return %c0_i32, %arg1 : i32, i32
  }
  func.func @transform_6(%arg0: i32, %arg1: i32) -> (i32, i32) {
    %c0_i32 = arith.constant 0 : i32
    %c0_i32_0 = arith.constant 0 : i32
    return %c0_i32, %arg1 : i32, i32
  }
  func.func @transform_7(%arg0: i32, %arg1: i32) -> (i32, i32, i32, i32) {
    %c0_i32 = arith.constant 0 : i32
    %c0_i32_0 = arith.constant 0 : i32
    %c0_i32_1 = arith.constant 0 : i32
    %c0_i32_2 = arith.constant 0 : i32
    return %arg0, %c0_i32, %c0_i32_0, %c0_i32_1 : i32, i32, i32, i32
  }
  func.func @transform_8(%arg0: i32, %arg1: i32) -> (i32, i32, i32) {
    %c0_i32 = arith.constant 0 : i32
    %c0_i32_0 = arith.constant 0 : i32
    return %arg0, %c0_i32, %arg1 : i32, i32, i32
  }
}

</mosaic_0001>

<bundles_post_ra>
// kernel: tpu_custom_call.1
= control target key start
LH: loop header
LB: loop body
LE: loop exit
PB: predicated region body
PF: predicated region fallthrough
CT: control target
= control target key end

     0   :  { %s1721_s0 = inlined_call_operand.hbm [shape: f32[2,8,32], index: 0, kind: input, shape index: {}]   ;;  %s1722_s1 = inlined_call_operand.hbm [shape: bf16[32,32], index: 1, kind: input, shape index: {}]   ;;  %s1723_s2 = inlined_call_operand.vmem [shape: f32[1,32], index: 2, kind: input, shape index: {}]   ;;  %s1724_s3 = inlined_call_operand.hbm [shape: bf16[32,32], index: 3, kind: input, shape index: {}]   ;;  %s1725_s4 = inlined_call_operand.hbm [shape: f32[1,32], index: 4, kind: input, shape index: {}]   ;;  %s1726_s5 = inlined_call_operand.hbm [shape: bf16[32,32], index: 5, kind: input, shape index: {}]   ;;  %s1727_s6 = inlined_call_operand.vmem [shape: f32[1,32], index: 6, kind: input, shape index: {}]   ;;  %s1728_s7 = inlined_call_operand.vmem [shape: f32[2,1,1,8], index: 7, kind: input, shape index: {}]   ;;  %s1729_s8 = inlined_call_operand.hbm [shape: f32[2,8,32], index: 8, kind: output, shape index: {}]  }
   0x1   :  { %1730 = sst [smem:[#allocation16_spill]] %s1722_s1 }
   0x2   :  { %1731 = sst [smem:[#allocation17_spill]] %s1724_s3 }
   0x3   :  { %13 = vsyncpa [#allocation3], 0 }
   0x4   :  { %15 = vsyncpa [#allocation3 + $0x1], 0 }
   0x5   :  { %16 = vsyncpa [#allocation6], 0 }
   0x6   :  { %17 = vsyncpa [#allocation9], 0 }
   0x7   :  { %18 = vsyncpa [#allocation4], 0 }
   0x8   :  { %20 = vsyncpa [#allocation4 + $0x1], 0  ;;  %s1499_s27 = smov 0   ;;  %s1501_s28 = smov 0  }
   0x9   :  { %s1503_s29 = smov 0   ;;  %s1505_s30 = smov 0  }
   0xa   :  { %s1507_s9 = smov 0   ;;  %s1509_s10 = smov 0  }
   0xb LB: > { %s1005_s11 = sadd.s32 4294967295, %s1440_s10   ;;  %p1007_p0 = scmp.ge.s32.totalorder %s1440_s10, 1  ;;  %s1440_s10 = sphi %s1509_s10, %s26_s10   ;;  %s1436_s9 = sphi %s1507_s9, %s1744_s9   ;;  %s1432_s30 = sphi %s1505_s30, %s1743_s30   ;;  %s1428_s29 = sphi %s1503_s29, %s1742_s29   ;;  %s1424_s28 = sphi %s1501_s28, %s1741_s28   ;;  %s1420_s27 = sphi %s1499_s27, %s1740_s27  }
   0xc   : > { %p1533_p1 = scmp.eq.s32.totalorder %s1005_s11, 0  ;;  %p279_p2 = scmp.lt.s32.totalorder %s1440_s10, 3 }
   0xd   : > { %s1733_s1 = sld [smem:[#allocation16_spill]]  ;;  %s1442_s17 = smov [#allocation5]  }
   0xe   : > { %p1541_p3 = pnand %p1007_p0, %p279_p2  ;;  %s294_s18 = sshll.u32 %s1442_s17, 4  ;;  %s295_s18 = int_to_ptr.vmem [resolvable:$true] %s294_s18 }
   0xf   : > { %p1014_p6 = scmp.ge.s32.totalorder %s1440_s10, 2  ;;  %s330_s22 = sshll.u32 %s1725_s4, 4  ;;  %s331_s22 = int_to_ptr.hbm [resolvable:$true] %s330_s22 }
  0x10   : > { %p1089_p4 = pneg %p1541_p3  ;;  %s1443_s23 = smov 64  }
  0x11   : > { %s1444_s24 = smov 4   ;;  %s1445_s25 = smov [#allocation8]  }
  0x12   : > { %p1549_p5 = pnand %p1089_p4, %p1533_p1  ;;  %s332_s26 = sshll.u32 %s1445_s25, 4  ;;  %s333_s26 = int_to_ptr.vmem [resolvable:$true] %s332_s26 }
  0x13   : > { %s292_s15 = sshll.u32 %s1733_s1, 4  ;;  %s1736_s3 = sld [smem:[#allocation17_spill]]  ;;  %s293_s15 = int_to_ptr.hbm [resolvable:$true] %s292_s15 }
  0x14   : > { %1092 = dma.hbm_to_vmem [thread:$0]  (!%p1549_p5), %s293_s15, 256, %s295_s18, [#allocation6], %s1443_s23, %s1443_s23, %s1444_s24  }
  0x15   : > { %1098 = dma.hbm_to_vmem [thread:$0]  (!%p1549_p5), %s331_s22, 16, %s333_s26, [#allocation9]  }
  0x16   : > { %s343_s15 = sshll.u32 %s1726_s5, 4  ;;  %s1446_s18 = smov [#allocation7]   ;;  %s344_s15 = int_to_ptr.hbm [resolvable:$true] %s343_s15 }
  0x17   : > { %s316_s25 = sshll.u32 %s1446_s18, 4  ;;  %s1447_s13 = smov [#allocation10]   ;;  %s317_s25 = int_to_ptr.vmem [resolvable:$true] %s316_s25 }
  0x18   : > { %s345_s14 = sshll.u32 %s1447_s13, 4  ;;  %s38_s22 = sadd.s32 1, %s1436_s9  ;;  %s346_s14 = int_to_ptr.vmem [resolvable:$true] %s345_s14 }
  0x19   : > { %s314_s17 = sshll.u32 %s1736_s3, 4  ;;  %s1006_s26 = sadd.s32 4294967294, %s1440_s10   ;;  %s315_s17 = int_to_ptr.hbm [resolvable:$true] %s314_s17 }
  0x1a   : > { %1095 = dma.hbm_to_vmem [thread:$0]  (!%p1549_p5), %s315_s17, 256, %s317_s25, [#allocation6], %s1443_s23, %s1443_s23, %s1444_s24  }
  0x1b   : > { %1101 = dma.hbm_to_vmem [thread:$0]  (!%p1549_p5), %s344_s15, 256, %s346_s14, [#allocation9], %s1443_s23, %s1443_s23, %s1444_s24  }
  0x1c   : > { %p40_p7 = scmp.ge.s32.totalorder %s38_s22, 2  ;;  %s45_s20 = sadd.s32 1, %s1428_s29 }
  0x1d   : > { %p52_p8 = scmp.ne.s32.totalorder %s1428_s29, %s1424_s28  ;;  %p53_p9 = scmp.eq.s32.totalorder %s1440_s10, 0 }
  0x1e   : > { %s1746_s22 = smov (%p40_p7, %s38_s22), 0  ;;  %p58_p10 = scmp.ne.s32.totalorder %s1424_s28, %s1420_s27 }
  0x1f   : > { %s42_s17 = ssub.s32 %s1436_s9, %s1746_s22  ;;  %p266_p11 = scmp.eq.s32.totalorder %s1005_s11, 1 }
  0x20   : > { %p43_p12 = scmp.eq.s32.totalorder %s42_s17, 0  ;;  %p1587_p13 = por %p1533_p1, %p58_p10 }
  0x21   : > { %p1591_p0 = por %p266_p11, %p52_p8  ;;  %p272_p2 = scmp.eq.s32.totalorder %s1006_s26, 1 }
  0x22   : > { %s1596_s24 = scalar_select %p43_p12, %s1428_s29, %s45_s20  }
  0x23   : > { %p54_p4 = por %p53_p9, %p52_p8  ;;  %p1598_p5 = por %p272_p2, %p58_p10 }
  0x24   : > { %s365_s15 = sand.u32 1, %s1428_s29   ;;  %s1016_s11 = sshll.u32 %s1436_s9, 3 }
  0x25   : > { %p1114_p7 = scmp.lt.s32.totalorder %s1440_s10, 2  ;;  %s1015_s18 = sshll.u32 %s365_s15, 3 }
  0x26   : > { %s373_s14 = scalar_lea.hbm %s1721_s0, %s1016_s11  ;;  %s369_s1 = scalar_lea.vmem [#allocation2], %s1015_s18 }
  0x27   : > { %s375_s17 = sshll.u32 %s373_s14, 4  ;;  %s377_s3 = sshll.u32 %s369_s1, 4  ;;  %s376_s17 = int_to_ptr.hbm [resolvable:$true] %s375_s17  ;;  %s378_s3 = int_to_ptr.vmem [resolvable:$true] %s377_s3 }
  0x28   : > { %p1103_p11 = pnand %p1114_p7, %p54_p4  ;;  %s366_s26 = scalar_lea.sflag [#allocation3], %s365_s15 }
  0x29   : > { %392 = sbr.rel (%p1541_p3) target bundleno = 987 (0x3db), region = 52  ;;  %s1611_s20 = sand.u32 (!%p1541_p3), 1, %s1424_s28  }
  0x2a   : > { %1105 = dma.hbm_to_vmem [thread:$0]  (!%p1103_p11), %s376_s17, 128, %s378_s3, %s366_s26  }
  0x2b   : > { %s1018_s25 = sshll.u32 (!%p1541_p3), %s1611_s20, 3  ;;  %s395_s11 = scalar_lea.sflag (!%p1541_p3), [#allocation3], %s1611_s20 }
  0x2c   : > { %s398_s18 = scalar_lea.vmem (!%p1541_p3), [#allocation2], %s1018_s25 }
  0x2e   : > { %1403 = dma.done.wait (%p1587_p13), %s395_s11, 128  }
  0x2f   : > { %1405 = vsyncadd (%p1587_p13), %s395_s11, 4294967168 }
  0x30   : > { %1407 = dma.done.wait (%p1533_p1), [#allocation6], 512  }
  0x31   : > { %1409 = vsyncadd (%p1533_p1), [#allocation6], 4294966784 }
  0x32   : > { %1411 = dma.done.wait (%p1533_p1), [#allocation9], 272  }
  0x33   : > { %1413 = vsyncadd (%p1533_p1), [#allocation9], 4294967024  ;;  %v1064_v0 = vld [vmem:[#allocation5 + $0x8] sm:$0xff]  ;;  %v1066_v1 = vld [vmem:[#allocation7 + $0x8] sm:$0xff]  ;;  %vm493_vm0 = vcmask 261120   ;;  %vm584_vm1 = vcmask 64512  }
  0x34   : > { %v1063_v2 = vld [vmem:[#allocation5] sm:$0xff]  ;;  %v1065_v3 = vld [vmem:[#allocation7] sm:$0xff]  ;;  %503 = vmatpush.bf16.msra.mxu0 %v1064_v0  ;;  %536 = vmatpush.bf16.msra.mxu1 %v1066_v1  ;;  %p467_p1 = scmp.lt.s32.totalorder %s1432_s30, 1  ;;  %s1448_s16 = smov 112   ;;  %vm619_vm2 = vcmask 1043456   ;;  %vm826_vm3 = vcmask 130048  }
  0x35   : > { %v471_v4 = vld [vmem:[%s398_s18] sm:$0xff]  ;;  %v1181_v7 = vld [vmem:[#allocation8] ss:$0 sm:$0xff]  ;;  %s1449_s19 = smov 120   ;;  %s1450_s17 = smov 104   ;;  %v1067_v37 = vld [vmem:[#allocation10] sm:$0xff] }
  0x36   : > { %v472_v5 = vpack.c.bf16 %v471_v4, %v471_v4  ;;  %v1180_v6 = vld [vmem:[%s1723_s2] ss:$0 sm:$0xff]  ;;  %s1637_s12 = scalar_select %p467_p1, %s1432_s30, 1  ;;  %vm828_vm4 = vcmask 195584  }
  0x37   : > { %v1068_v22 = vld [vmem:[#allocation10 + $0x8] sm:$0xff]  ;;  %s1451_s18 = smov 8   ;;  %s1452_s1 = smov 24  }
  0x38   : > { %504 = vmatpush.bf16.msra.mxu0 %v1063_v2  ;;  %537 = vmatpush.bf16.msra.mxu1 %v1065_v3  ;;  %s469_s14 = scalar_lea.vmem %s1728_s7, %s1637_s12  ;;  %v1183_v55 = vld [vmem:[%s1727_s6] ss:$0 sm:$0xff]  ;;  %s1453_s3 = smov 16  }
  0x39   : > { %569 = vmatpush.bf16.msra.mxu2 %v1068_v22  ;;  %v1182_v31 = vld [vmem:[%s469_s14] ss:$0 sm:$0xff]  ;;  %s1060_s12 = sshll.u32 %s1432_s30, 3  ;;  %s460_s13 = scalar_lea.vmem [#allocation11], %s1018_s25 }
  0x3a   : > { %s843_s15 = scalar_lea.hbm %s1729_s8, %s1060_s12  ;;  %s845_s14 = sshll.u32 %s460_s13, 4  ;;  %s846_s14 = int_to_ptr.vmem [resolvable:$true] %s845_s14 }
  0x3b   : > { %1032 = vmatmul.msk.bf16.vlgmr.msra.gmra.mxu0 %vm493_vm0, %v472_v5  ;;  %1041 = vmatmul.msk.bf16.vlgmr.msra.gmra.mxu1 %vm493_vm0, %v472_v5  ;;  %s832_s30 = scalar_lea.sflag [#allocation4], %s1611_s20 }
  0x3d   : > { %570 = vmatpush.bf16.msra.mxu2 %v1067_v37 }
  0x40   : > { %1050 = vmatmul.msk.bf16.vlgmr.msra.gmra.mxu2 %vm493_vm0, %v472_v5 }
  0xb8   : > { %v506_v8 = vpop.f32.mrf.mxu0  ;;  %v539_v9 = vpop.f32.mrf.mxu1 }
  0xb9   : > { %v507_v10 = vadd.f32 %v1180_v6, %v506_v8  ;;  %v540_v11 = vadd.f32 %v1181_v7, %v539_v9 }
  0xbb   : > { %v576_v12 = vmul.f32 0.35355338, %v507_v10  ;;  %v578_v13 = vpack.c.bf16 %v540_v11, %v540_v11 }
  0xbd   : > { %v577_v14 = vpack.c.bf16 %v576_v12, %v576_v12  ;;  %v642_v15 = vunpack.c.l.b16 %v578_v13  ;;  %v589_v16 = vsel %vm584_vm1, %v578_v13, 0 }
  0xbe   : > { %598 = vmatpush.bf16.xpose.msra.mxu3 %v589_v16 }
  0xbf   : > { %v637_v17 = vunpack.c.l.b16 %v577_v14  ;;  %v643_v18 = vpack.c.b16 %v642_v15, %v642_v15 }
  0xc0   : > { %v508_v19 = vpop.f32.mrf.mxu0  ;;  %v541_v20 = vpop.f32.mrf.mxu1 }
  0xc1   : > { %703 = vrot.lane.b32.xlu1 %v643_v18, %s1448_s16  ;;  %644 = vrot.lane.b32.xlu0 %v643_v18, %s1449_s19  ;;  %v638_v21 = vpack.c.b16 %v637_v17, %v637_v17 }
  0xc3   : > { %701 = vrot.lane.b32.xlu2 %v638_v21, %s1448_s16  ;;  %v572_v56 = vpop.f32.mrf.mxu2 }
  0xc4   : > { %v573_v57 = vadd.f32 %v1183_v55, %v572_v56 }
  0xc5   : > { %1051 = vmatmul.msk.bf16.vlgmr.msra.gmra.mxu3 %vm584_vm1, %v577_v14 }
  0xc6   : > { %v579_v58 = vpack.c.bf16 %v573_v57, %v573_v57 }
  0xc8   : > { %v678_v59 = vunpack.c.l.b16 %v579_v58  ;;  %v621_v60 = vsel %vm619_vm2, %v579_v58, 0 }
  0xc9   : > { %759 = vrot.lane.b32.xlu1 %v643_v18, %s1450_s17  ;;  %639 = vrot.lane.b32.xlu0 %v638_v21, %s1449_s19 }
  0xca   : > { %630 = vmatpush.bf16.msrb.mxu0 %v621_v60  ;;  %v679_v61 = vpack.c.b16 %v678_v59, %v678_v59 }
  0xcb   : > { %757 = vrot.lane.b32.xlu2 %v638_v21, %s1450_s17  ;;  %v574_v62 = vpop.f32.mrf.mxu2 }
 0x11d   : > { %v702_v27 = vpop.permute.xlu2 %701 }
 0x125   : > { %v758_v34 = vpop.permute.xlu2 %757 }
 0x133   : > { %v704_v23 = vpop.permute.xlu1 %703  ;;  %v645_v24 = vpop.permute.xlu0 %644 }
 0x134   : > { %v650_v25 = vsel %vm584_vm1, %v645_v24, 0  ;;  %v709_v26 = vsel %vm584_vm1, %v704_v23, 0 }
 0x135   : > { %659 = vmatpush.bf16.xpose.msrb.mxu1 %v650_v25  ;;  %718 = vmatpush.bf16.xpose.msrb.mxu3 %v709_v26 }
 0x13b   : > { %v760_v28 = vpop.permute.xlu1 %759  ;;  %v640_v29 = vpop.permute.xlu0 %639 }
 0x13c   : > { %v765_v30 = vsel %vm584_vm1, %v760_v28, 0  ;;  %1053 = vmatmul.msk.bf16.vlgmr.msrb.gmra.mxu1 %vm584_vm1, %v640_v29  ;;  %1055 = vmatmul.msk.bf16.vlgmr.msrb.gmra.mxu3 %vm584_vm1, %v702_v27 }
 0x13d   : > { %774 = vmatpush.bf16.xpose.msra.mxu1 %v765_v30 }
 0x148   : > { %v600_v32 = vpop.f32.mrf.mxu3 }
 0x149   : > { %v601_v33 = vadd.f32 %v1182_v31, %v600_v32 }
 0x14b   : > { %v604_v35 = vsel %vm584_vm1, %v601_v33, -inf }
 0x14c   : > { %1057 = vmatmul.msk.bf16.vlgmr.msra.gmra.mxu1 %vm584_vm1, %v758_v34  ;;  %605 = vmax.xlane.f32.xlu1 %v604_v35 }
 0x150   : > { %v602_v36 = vpop.f32.mrf.mxu3 }
 0x1b9   : > { %v661_v38 = vpop.f32.mrf.mxu1 }
 0x1ba   : > { %v662_v39 = vadd.f32 %v1182_v31, %v661_v38 }
 0x1bc   : > { %v665_v40 = vsel %vm584_vm1, %v662_v39, -inf }
 0x1bd   : > { %666 = vmax.xlane.f32.xlu0 %v665_v40 }
 0x1bf   : > { %v720_v41 = vpop.f32.mrf.mxu3  ;;  %v606_v42 = vpop.xlane.xlu1 %605 }
 0x1c0   : > { %v607_v43 = vsub.f32 %v601_v33, %v606_v42  ;;  %v721_v52 = vadd.f32 %v1182_v31, %v720_v41 }
 0x1c1   : > { %v663_v44 = vpop.f32.mrf.mxu1 }
 0x1c2   : > { %v608_v45 = vmul.f32 1.442695, %v607_v43  ;;  %v724_v54 = vsel %vm584_vm1, %v721_v52, -inf }
 0x1c4   : > { %1184 = vpow2.f32 %v608_v45 }
 0x1c7   : > { %v722_v46 = vpop.f32.mrf.mxu3 }
 0x1c9   : > { %v776_v47 = vpop.f32.mrf.mxu1 }
 0x1ca   : > { %v1185_v48 = vpop.eup %1184  ;;  %v777_v49 = vadd.f32 %v1182_v31, %v776_v47 }
 0x1cb   : > { %v610_v50 = vsel %vm584_vm1, %v1185_v48, 0.0 }
 0x1cc   : > { %611 = vadd.xlane.f32.xlu1 %v610_v50  ;;  %v780_v51 = vsel %vm584_vm1, %v777_v49, -inf }
 0x1cd   : > { %781 = vmax.xlane.f32.xlu2 %v780_v51 }
 0x1d1   : > { %v778_v53 = vpop.f32.mrf.mxu1 }
 0x1d5   : > { %725 = vmax.xlane.f32.xlu2 %v724_v54 }
 0x1ed   : > { %680 = vrot.lane.b32.xlu2 %v679_v61, %s1449_s19 }
 0x230   : > { %v667_v63 = vpop.xlane.xlu0 %666 }
 0x231   : > { %v668_v0 = vsub.f32 %v662_v39, %v667_v63 }
 0x233   : > { %v669_v1 = vmul.f32 1.442695, %v668_v0 }
 0x235   : > { %1186 = vpow2.f32 %v669_v1 }
 0x23b   : > { %v1187_v2 = vpop.eup %1186 }
 0x23c   : > { %v671_v3 = vsel %vm584_vm1, %v1187_v2, 0.0 }
 0x23d   : > { %672 = vadd.xlane.f32.xlu0 %v671_v3 }
 0x23f   : > { %v612_v4 = vpop.xlane.xlu1 %611 }
 0x240   : > { %1188 = vrcp.f32 %v612_v4  ;;  %v782_v5 = vpop.xlane.xlu2 %781 }
 0x241   : > { %v783_v6 = vsub.f32 %v777_v49, %v782_v5 }
 0x243   : > { %v784_v7 = vmul.f32 1.442695, %v783_v6 }
 0x245   : > { %1190 = vpow2.f32 %v784_v7 }
 0x246   : > { %v1189_v8 = vpop.eup %1188 }
 0x247   : > { %v614_v9 = vmul.f32 %v1189_v8, %v1185_v48 }
 0x248   : > { %v726_v10 = vpop.xlane.xlu2 %725 }
 0x249   : > { %v727_v11 = vsub.f32 %v721_v52, %v726_v10  ;;  %v615_v12 = vpack.c.bf16 %v614_v9, %v614_v9 }
 0x24b   : > { %v1191_v13 = vpop.eup %1190  ;;  %v728_v14 = vmul.f32 1.442695, %v727_v11  ;;  %1052 = vmatmul.msk.bf16.vlgmr.msrb.gmra.mxu0 %vm584_vm1, %v615_v12 }
 0x24c   : > { %v786_v15 = vsel %vm584_vm1, %v1191_v13, 0.0 }
 0x24d   : > { %1192 = vpow2.f32 %v728_v14  ;;  %787 = vadd.xlane.f32.xlu0 %v786_v15 }
 0x250   : > { %v681_v18 = vpop.permute.xlu2 %680 }
 0x251   : > { %v686_v19 = vsel %vm619_vm2, %v681_v18, 0 }
 0x252   : > { %695 = vmatpush.bf16.msrb.mxu2 %v686_v19 }
 0x253   : > { %v1193_v16 = vpop.eup %1192 }
 0x254   : > { %v730_v17 = vsel %vm584_vm1, %v1193_v16, 0.0 }
 0x255   : > { %731 = vadd.xlane.f32.xlu1 %v730_v17 }
 0x261   : > { %792 = vrot.lane.b32.xlu0 %v679_v61, %s1450_s17  ;;  %s847_s17 = sshll.u32 %s843_s15, 4  ;;  %s848_s17 = int_to_ptr.hbm [resolvable:$true] %s847_s17 }
 0x262   : > { %s1364_s26 = sshra.s32 %s848_s17, 4  ;;  %s1365_s26 = int_to_ptr.hbm [resolvable:$true] %s1364_s26 }
 0x263   : > { %s1366_s11 = scalar_lea.hbm %s1365_s26, 8  ;;  %p1371_p10 = scmp.lt.s32.totalorder %s1365_s26, %s1729_s8 }
 0x264   : > { %p1367_p3 = scmp.ne.s32.totalorder %s1365_s26, %s1366_s11 }
 0x266   : > { %p1368_p8 = pnand %p1367_p3, %p1591_p0 }
 0x268   : > { %p1369_p9 = pneg %p1368_p8 }
 0x26e   : > { %736 = vrot.lane.b32.xlu1 %v679_v61, %s1448_s16 }
 0x2b0   : > { %v673_v20 = vpop.xlane.xlu0 %672 }
 0x2b1   : > { %1194 = vrcp.f32 %v673_v20 }
 0x2b7   : > { %v1195_v21 = vpop.eup %1194 }
 0x2b8   : > { %v675_v22 = vmul.f32 %v1195_v21, %v1187_v2 }
 0x2ba   : > { %v676_v23 = vpack.c.bf16 %v675_v22, %v675_v22 }
 0x2bc   : > { %1054 = vmatmul.msk.bf16.vlgmr.msrb.gmra.mxu2 %vm584_vm1, %v676_v23 }
 0x2c0   : > { %v788_v24 = vpop.xlane.xlu0 %787 }
 0x2c1   : > { %1196 = vrcp.f32 %v788_v24 }
 0x2c7   : > { %v1197_v26 = vpop.eup %1196 }
 0x2c8   : > { %v632_v25 = vpop.f32.mrf.mxu0  ;;  %v790_v28 = vmul.f32 %v1197_v26, %v1191_v13  ;;  %v732_v29 = vpop.xlane.xlu1 %731 }
 0x2c9   : > { %1198 = vrcp.f32 %v732_v29 }
 0x2ca   : > { %v791_v32 = vpack.c.bf16 %v790_v28, %v790_v28 }
 0x2cf   : > { %v1199_v33 = vpop.eup %1198 }
 0x2d0   : > { %v634_v27 = vpop.f32.mrf.mxu0  ;;  %v734_v34 = vmul.f32 %v1199_v33, %v1193_v16 }
 0x2d2   : > { %v735_v37 = vpack.c.bf16 %v734_v34, %v734_v34 }
 0x2d3   : > { %v793_v30 = vpop.permute.xlu0 %792 }
 0x2d4   : > { %v798_v31 = vsel %vm619_vm2, %v793_v30, 0 }
 0x2d5   : > { %807 = vmatpush.bf16.msra.mxu2 %v798_v31 }
 0x2d8   : > { %1058 = vmatmul.msk.bf16.vlgmr.msra.gmra.mxu2 %vm584_vm1, %v791_v32 }
 0x2e0   : > { %v737_v35 = vpop.permute.xlu1 %736 }
 0x2e1   : > { %v742_v36 = vsel %vm619_vm2, %v737_v35, 0 }
 0x2e2   : > { %751 = vmatpush.bf16.msra.mxu0 %v742_v36 }
 0x2e5   : > { %1056 = vmatmul.msk.bf16.vlgmr.msra.gmra.mxu0 %vm584_vm1, %v735_v37 }
 0x33f   : > { %v697_v38 = vpop.f32.mrf.mxu2 }
 0x340   : > { %814 = vrot.lane.b32.xlu2 %v697_v38, %s1451_s18 }
 0x347   : > { %v699_v39 = vpop.f32.mrf.mxu2 }
 0x35b   : > { %v809_v40 = vpop.f32.mrf.mxu2 }
 0x35c   : > { %822 = vrot.lane.b32.xlu2 %v809_v40, %s1452_s1  ;;  %s1370_s1 = scalar_lea.hbm %s1729_s8, 16 }
 0x35d   : > { %p1372_p12 = scmp.lt.s32.totalorder %s1370_s1, %s1366_s11 }
 0x35f   : > { %p1373_p13 = por %p1372_p12, %p1371_p10 }
 0x361   : > { %p1374_p2 = pnand %p1373_p13, %p1369_p9 }
 0x362   : > { %v753_v41 = vpop.f32.mrf.mxu0 }
 0x363   : > { %v811_v42 = vpop.f32.mrf.mxu2  ;;  %818 = vrot.lane.b32.xlu0 %v753_v41, %s1453_s3 }
 0x36a   : > { %v755_v43 = vpop.f32.mrf.mxu0 }
 0x39a   : > { %v815_v44 = vpop.permute.xlu2 %814 }
 0x39b   : > { %v825_v45 = vsel %vm584_vm1, %v632_v25, %v815_v44 }
 0x3b6   : > { %v823_v47 = vpop.permute.xlu2 %822 }
 0x3d5   : > { %v819_v46 = vpop.permute.xlu0 %818 }
 0x3d6   : > { %v827_v48 = vsel %vm826_vm3, %v825_v45, %v819_v46 }
 0x3d7   : > { %v829_v49 = vsel %vm828_vm4, %v827_v48, %v823_v47 }
 0x3d8   : > { %830 = vst.msk [vmem:[%s460_s13] sm:$0xff] %vm493_vm0, %v829_v49 }
 0x3d9   : > { %1377 = shalt.err (!%p1374_p2)
}
 0x3da   : > { %1087 = dma.vmem_to_hbm [thread:$0]  (%p1591_p0), %s846_s14, 128, %s848_s17, %s832_s30  }
 0x3db PF: > { %s859_s20 = sand.u32 1, %s1420_s27   ;;  %p1107_p4 = pnand %p1014_p6, %p1598_p5 }
 0x3dc   : > { %s860_s16 = scalar_lea.sflag [#allocation4], %s859_s20 }
 0x3dd   : > { %p1108_p7 = pneg %p1107_p4 }
 0x3df   : > { %1415 = dma.done.wait (%p1108_p7), %s860_s16, 128  }
 0x3e0   : > { %1417 = vsyncadd (%p1108_p7), %s860_s16, 4294967168  ;;  %s26_s10 = sadd.s32 1, %s1440_s10   ;;  %s1740_s27 = smov %s1424_s28 }
 0x3e1   : > { %p23_p11 = scmp.ge.s32.totalorder %s26_s10, 4   ;;  %s1741_s28 = smov %s1428_s29 }
 0x3e2   : > { %s1742_s29 = smov %s1596_s24  ;;  %s1743_s30 = smov %s1436_s9 }
 0x3e3   : > { %s1744_s9 = smov %s1746_s22  ;;  %25 = sbr.rel (!%p23_p11) target bundleno = 11 (0xb), region = 126 }
 0x3e8   :  { %866 = vsyncpa [#allocation3], 1 }
 0x3e9   :  { %868 = vsyncpa [#allocation3 + $0x1], 1 }
 0x3ea   :  { %869 = vsyncpa [#allocation6], 1 }
 0x3eb   :  { %870 = vsyncpa [#allocation9], 1 }
 0x3ec   :  { %871 = vsyncpa [#allocation4], 1 }
 0x3ed   :  { %873 = vsyncpa [#allocation4 + $0x1], 1 }

</bundles_post_ra>
